<compile_context>
chip_gen: v7x
topology: tpu7x:2x2x1
jax: 0.10.0
libtpu: 0.0.40
codegen_flags: <defaults>
</compile_context>

<pallas_src>
import numpy as np
import jax
import jax.numpy as jnp
from jax.experimental import pallas as pl
from jax.experimental.pallas import tpu as pltpu


HIDDEN_DIM = 400  # fixed inside the PyTorch module


def _round_up(n, m):
    return ((n + m - 1) // m) * m


def _pick_tn(out_p, cap):
    """Largest multiple-of-128 divisor of out_p that is <= cap."""
    if out_p <= cap:
        return out_p
    k = out_p // 128
    best = 1
    for d in range(1, k + 1):
        if k % d == 0 and 128 * d <= cap:
            best = d
    return 128 * best


def _generator_kernel(x_ref, w1_ref, b1_ref, w2_ref, b2_ref, o_ref, h_ref):
    # Layer 1 only once per batch tile (j == 0); result cached in bf16 scratch
    # so the second matmul consumes a native-bf16 MXU operand.
    @pl.when(pl.program_id(1) == 0)
    def _():
        h = jnp.dot(x_ref[...], w1_ref[...],
                    preferred_element_type=jnp.float32)
        h_ref[...] = jnp.maximum(h + b1_ref[...], 0.0).astype(jnp.bfloat16)

    g = jnp.dot(h_ref[...], w2_ref[...], preferred_element_type=jnp.float32)
    z = g + b2_ref[...]
    # sigmoid(z) = 1 / (1 + exp(-z)): exp and approx reciprocal both land on
    # the (otherwise idle) EUP slot instead of a VPU divide.
    o_ref[...] = pl.reciprocal(1.0 + jnp.exp(-z), approx=True).astype(o_ref.dtype)


def prepare_params(w1, b1, w2, b2):
    """Zero-pad z_dim->mult(128), hidden 400->512, out_dim->mult(128); store
    weights as bf16 (HBM bandwidth + native MXU dtype).  Biases stay f32.
    Padded hidden units have zero weight AND zero bias, so they are exactly 0
    after ReLU and the padded W2 rows contribute nothing: math unchanged."""
    z_dim, hidden = w1.shape
    _, out_dim = w2.shape
    zp = _round_up(z_dim, 128)
    hid_p = _round_up(hidden, 128)
    out_p = _round_up(out_dim, 128)

    w1p = jnp.zeros((zp, hid_p), jnp.float32).at[:z_dim, :hidden].set(w1)
    b1p = jnp.zeros((1, hid_p), jnp.float32).at[:, :hidden].set(
        jnp.reshape(b1, (1, hidden)))
    w2p = jnp.zeros((hid_p, out_p), jnp.float32).at[:hidden, :out_dim].set(w2)
    b2p = jnp.zeros((1, out_p), jnp.float32).at[:, :out_dim].set(
        jnp.reshape(b2, (1, out_dim)))

    return (w1p.astype(jnp.bfloat16), b1p,
            w2p.astype(jnp.bfloat16), b2p, int(out_dim))


def generator_forward(x, params, image_shape, *, tile_m=256, tile_n_cap=2048,
                      out_dtype=jnp.float32):
    """x: (B, z_dim) float32. params from prepare_params.
    Returns (B,) + image_shape (NCHW, matching the PyTorch module)."""
    w1, b1, w2, b2, out_dim = params
    B, z_dim = x.shape
    zp, hid_p = w1.shape
    out_p = w2.shape[1]
    assert int(np.prod(image_shape)) == out_dim
    assert z_dim <= zp

    # Batch tiling: keep b_pad close to B; >= 2 tiles when B >= 16 so both
    # v7x TensorCores get work.  Sublane-align tm (16 for sub-32-bit output).
    align = 16 if jnp.dtype(out_dtype).itemsize < 4 else 8
    n_bt = max(pl.cdiv(B, tile_m), 2 if B >= 16 else 1)
    tm = _round_up(pl.cdiv(B, n_bt), align)
    b_pad = _round_up(B, tm)
    grid_m = b_pad // tm

    # Output-column tiling keeps the W2 / output VMEM blocks bounded.
    tn = _pick_tn(out_p, tile_n_cap)
    grid_n = out_p // tn

    # Pad batch + z_dim and cast to bf16 in one shot (MXU-native operand).
    x_p = jnp.zeros((b_pad, zp), jnp.bfloat16).at[:B, :z_dim].set(
        x.astype(jnp.bfloat16))

    out_itemsize = jnp.dtype(out_dtype).itemsize
    vmem_need = (2 * tm * zp * 2            # x tile (double-buffered)
                 + 2 * zp * hid_p * 2       # W1 (bf16)
                 + 2 * hid_p * 4            # b1
                 + 2 * hid_p * tn * 2       # W2 column tile (bf16)
                 + 2 * tn * 4               # b2 column tile
                 + 2 * tm * tn * out_itemsize   # output tile
                 + tm * hid_p * 2)          # h scratch (bf16)
    vmem_limit = int(min(64 << 20, max(2 * vmem_need, 16 << 20)))

    flops = 2 * b_pad * (zp * hid_p + hid_p * out_p)
    bytes_accessed = int(x_p.size * 2 + w1.size * 2 + b1.size * 4
                         + grid_m * (w2.size * 2 + b2.size * 4)
                         + b_pad * out_p * out_itemsize)

    out2d = pl.pallas_call(
        _generator_kernel,
        out_shape=jax.ShapeDtypeStruct((b_pad, out_p), out_dtype),
        grid=(grid_m, grid_n),
        in_specs=[
            pl.BlockSpec((tm, zp), lambda i, j: (i, 0)),       # x batch tile
            pl.BlockSpec((zp, hid_p), lambda i, j: (0, 0)),    # W1 resident
            pl.BlockSpec((1, hid_p), lambda i, j: (0, 0)),     # b1 resident
            pl.BlockSpec((hid_p, tn), lambda i, j: (0, j)),    # W2 column tile
            pl.BlockSpec((1, tn), lambda i, j: (0, j)),        # b2 column tile
        ],
        out_specs=pl.BlockSpec((tm, tn), lambda i, j: (i, j)),
        scratch_shapes=[pltpu.VMEM((tm, hid_p), jnp.bfloat16)],  # cached h
        compiler_params=pltpu.CompilerParams(
            dimension_semantics=("parallel", "arbitrary"),
            vmem_limit_bytes=vmem_limit),
        cost_estimate=pl.CostEstimate(
            flops=flops,
            transcendentals=2 * b_pad * out_p,   # exp + reciprocal per output
            bytes_accessed=bytes_accessed),
    )(x_p, w1, b1, w2, b2)

    return out2d[:B, :out_dim].reshape((B,) + tuple(image_shape))


def init_params(key, z_dim, hidden_dim, out_dim):
    """Deterministic synthetic parameters (PyTorch Linear-style uniform init),
    stored already transposed to (in, out) layout for the kernel."""
    k1, k2, k3, k4 = jax.random.split(key, 4)
    bound1 = 1.0 / np.sqrt(z_dim)
    bound2 = 1.0 / np.sqrt(hidden_dim)
    w1 = jax.random.uniform(k1, (z_dim, hidden_dim), jnp.float32, -bound1, bound1)
    b1 = jax.random.uniform(k2, (1, hidden_dim), jnp.float32, -bound1, bound1)
    w2 = jax.random.uniform(k3, (hidden_dim, out_dim), jnp.float32, -bound2, bound2)
    b2 = jax.random.uniform(k4, (1, out_dim), jnp.float32, -bound2, bound2)
    return w1, b1, w2, b2


def _reference(x, params, image_shape):
    # Mirrors the kernel math (bf16 weights, bf16 activations, f32 accumulate).
    w1, b1, w2, b2, out_dim = params
    B, z_dim = x.shape
    xb = x.astype(jnp.bfloat16)
    h = jnp.dot(xb, w1[:z_dim], preferred_element_type=jnp.float32) + b1
    hb = jnp.maximum(h, 0.0).astype(jnp.bfloat16)
    g = jnp.dot(hb, w2, preferred_element_type=jnp.float32) + b2
    out = jax.nn.sigmoid(g)
    return out[:, :out_dim].reshape((B,) + tuple(image_shape))


if __name__ == "__main__":
    key = jax.random.PRNGKey(0)
    kx1, kp1, kx2, kp2, kx3, kp3 = jax.random.split(key, 6)

    # --- Case 1: small shapes consistent with the module -------------------
    batch, z_dim = 2, 8
    image_shape = (1, 16, 16)                 # (C, H, W); out_dim = 256
    out_dim = int(np.prod(image_shape))
    x = jax.random.normal(kx1, (batch, z_dim), dtype=jnp.float32)
    params = prepare_params(*init_params(kp1, z_dim, HIDDEN_DIM, out_dim))

    out = jax.block_until_ready(generator_forward(x, params, image_shape))
    assert out.shape == (batch,) + image_shape and out.dtype == jnp.float32
    np.testing.assert_allclose(np.asarray(out),
                               np.asarray(_reference(x, params, image_shape)),
                               rtol=1e-2, atol=1e-2)

    # --- Case 2: multi-batch-tile grid, non-128-multiple out_dim -----------
    batch2 = 300
    image_shape2 = (1, 28, 28)                # out_dim = 784 -> padded to 896
    out_dim2 = int(np.prod(image_shape2))
    x2 = jax.random.normal(kx2, (batch2, z_dim), dtype=jnp.float32)
    params2 = prepare_params(*init_params(kp2, z_dim, HIDDEN_DIM, out_dim2))

    out2 = jax.block_until_ready(generator_forward(x2, params2, image_shape2))
    assert out2.shape == (batch2,) + image_shape2
    ref2 = _reference(x2, params2, image_shape2)
    np.testing.assert_allclose(np.asarray(out2), np.asarray(ref2),
                               rtol=1e-2, atol=1e-2)

    # --- Case 2b: optional bf16 output (halved HBM writeback) --------------
    out2b = jax.block_until_ready(
        generator_forward(x2, params2, image_shape2, out_dtype=jnp.bfloat16))
    assert out2b.dtype == jnp.bfloat16 and out2b.shape == (batch2,) + image_shape2
    np.testing.assert_allclose(np.asarray(out2b.astype(jnp.float32)),
                               np.asarray(ref2), rtol=2e-2, atol=2e-2)

    # --- Case 3: larger image -> output-column tiling (grid_n > 1) ---------
    batch3 = 32
    image_shape3 = (3, 32, 32)                # out_dim = 3072 -> tn=1536, 2 col tiles
    out_dim3 = int(np.prod(image_shape3))
    x3 = jax.random.normal(kx3, (batch3, z_dim), dtype=jnp.float32)
    params3 = prepare_params(*init_params(kp3, z_dim, HIDDEN_DIM, out_dim3))

    out3 = jax.block_until_ready(generator_forward(x3, params3, image_shape3))
    assert out3.shape == (batch3,) + image_shape3
    np.testing.assert_allclose(np.asarray(out3),
                               np.asarray(_reference(x3, params3, image_shape3)),
                               rtol=1e-2, atol=1e-2)

    print("KERNEL_OK")
</pallas_src>

<mosaic_0001>
module attributes {stable_mosaic.version = 11 : i64} {
  func.func @_generator_kernel(%arg0: i32, %arg1: i32, %arg2: memref<8x128xbf16, #tpu.memory_space<vmem>>, %arg3: memref<128x512xbf16, #tpu.memory_space<vmem>>, %arg4: memref<1x512xf32, #tpu.memory_space<vmem>>, %arg5: memref<512x256xbf16, #tpu.memory_space<vmem>>, %arg6: memref<1x256xf32, #tpu.memory_space<vmem>>, %arg7: memref<8x256xf32, #tpu.memory_space<vmem>>, %arg8: memref<8x512xbf16, #tpu.memory_space<vmem>>) attributes {dimension_semantics = [#tpu.dimension_semantics<parallel>, #tpu.dimension_semantics<arbitrary>], iteration_bounds = array<i64: 1, 1>, scalar_prefetch = 0 : i64, scratch_operands = 1 : i64, tpu.core_type = #tpu.core_type<tc>, window_params = [{transform_indices = @transform_0, window_bounds = array<i64: 8, 128>}, {pipeline_mode = #tpu.pipeline_mode<synchronous>, transform_indices = @transform_1, window_bounds = array<i64: 128, 512>}, {pipeline_mode = #tpu.pipeline_mode<synchronous>, transform_indices = @transform_2, window_bounds = array<i64: 1, 512>}, {transform_indices = @transform_3, window_bounds = array<i64: 512, 256>}, {transform_indices = @transform_4, window_bounds = array<i64: 1, 256>}, {transform_indices = @transform_5, window_bounds = array<i64: 8, 256>}]} {
    %c0_i32 = arith.constant 0 : i32
    %0 = arith.cmpi eq, %arg1, %c0_i32 : i32
    %1 = arith.extui %0 : i1 to i32
    %c0_i32_0 = arith.constant 0 : i32
    %2 = arith.cmpi ne, %1, %c0_i32_0 : i32
    scf.if %2 {
      %c0_10 = arith.constant 0 : index
      %c0_11 = arith.constant 0 : index
      %16 = vector.load %arg2[%c0_10, %c0_11] : memref<8x128xbf16, #tpu.memory_space<vmem>>, vector<8x128xbf16>
      %c0_12 = arith.constant 0 : index
      %c0_13 = arith.constant 0 : index
      %17 = vector.load %arg3[%c0_12, %c0_13] : memref<128x512xbf16, #tpu.memory_space<vmem>>, vector<128x512xbf16>
      %cst_14 = arith.constant dense<0.000000e+00> : vector<8x512xf32>
      %18 = tpu.matmul %16, %17, %cst_14 {dimension_numbers = #tpu.dot_dimension_numbers<[1], [0], [0], [1], [0, 0, 1, 1], [], []>} : vector<8x128xbf16>, vector<128x512xbf16>, vector<8x512xf32> -> vector<8x512xf32>
      %c0_15 = arith.constant 0 : index
      %c0_16 = arith.constant 0 : index
      %19 = vector.load %arg4[%c0_15, %c0_16] : memref<1x512xf32, #tpu.memory_space<vmem>>, vector<1x512xf32>
      %20 = vector.broadcast %19 : vector<1x512xf32> to vector<8x512xf32>
      %21 = arith.addf %18, %20 : vector<8x512xf32>
      %cst_17 = arith.constant 0.000000e+00 : f32
      %22 = vector.broadcast %cst_17 : f32 to vector<8x512xf32>
      %23 = arith.maximumf %21, %22 : vector<8x512xf32>
      %24 = arith.truncf %23 : vector<8x512xf32> to vector<8x512xbf16>
      %c0_18 = arith.constant 0 : index
      %c0_19 = arith.constant 0 : index
      %25 = vector.load %arg8[%c0_18, %c0_19] : memref<8x512xbf16, #tpu.memory_space<vmem>>, vector<8x512xbf16>
      tpu.vector_store %arg8[%c0_18, %c0_19], %24 {strides = array<i32>} : memref<8x512xbf16, #tpu.memory_space<vmem>>, vector<8x512xbf16>,
    } else {
    }
    %c0 = arith.constant 0 : index
    %c0_1 = arith.constant 0 : index
    %3 = vector.load %arg8[%c0, %c0_1] : memref<8x512xbf16, #tpu.memory_space<vmem>>, vector<8x512xbf16>
    %c0_2 = arith.constant 0 : index
    %c0_3 = arith.constant 0 : index
    %4 = vector.load %arg5[%c0_2, %c0_3] : memref<512x256xbf16, #tpu.memory_space<vmem>>, vector<512x256xbf16>
    %cst = arith.constant dense<0.000000e+00> : vector<8x256xf32>
    %5 = tpu.matmul %3, %4, %cst {dimension_numbers = #tpu.dot_dimension_numbers<[1], [0], [0], [1], [0, 0, 1, 1], [], []>} : vector<8x512xbf16>, vector<512x256xbf16>, vector<8x256xf32> -> vector<8x256xf32>
    %c0_4 = arith.constant 0 : index
    %c0_5 = arith.constant 0 : index
    %6 = vector.load %arg6[%c0_4, %c0_5] : memref<1x256xf32, #tpu.memory_space<vmem>>, vector<1x256xf32>
    %7 = vector.broadcast %6 : vector<1x256xf32> to vector<8x256xf32>
    %8 = arith.addf %5, %7 : vector<8x256xf32>
    %cst_6 = arith.constant 0.000000e+00 : f32
    %9 = vector.broadcast %cst_6 : f32 to vector<8x256xf32>
    %10 = arith.subf %9, %8 : vector<8x256xf32>
    %11 = math.exp %10 : vector<8x256xf32>
    %cst_7 = arith.constant 1.000000e+00 : f32
    %12 = vector.broadcast %cst_7 : f32 to vector<8x256xf32>
    %13 = arith.addf %12, %11 : vector<8x256xf32>
    %14 = tpu.reciprocal %13 {approx = true} : vector<8x256xf32> -> vector<8x256xf32>
    %c0_8 = arith.constant 0 : index
    %c0_9 = arith.constant 0 : index
    %15 = vector.load %arg7[%c0_8, %c0_9] : memref<8x256xf32, #tpu.memory_space<vmem>>, vector<8x256xf32>
    tpu.vector_store %arg7[%c0_8, %c0_9], %14 {strides = array<i32>} : memref<8x256xf32, #tpu.memory_space<vmem>>, vector<8x256xf32>,
    return
  }
  func.func @transform_0(%arg0: i32, %arg1: i32) -> (i32, i32) {
    %c0_i32 = arith.constant 0 : i32
    %c0_i32_0 = arith.constant 0 : i32
    return %arg0, %c0_i32 : i32, i32
  }
  func.func @transform_1(%arg0: i32, %arg1: i32) -> (i32, i32) {
    %c0_i32 = arith.constant 0 : i32
    %c0_i32_0 = arith.constant 0 : i32
    %c0_i32_1 = arith.constant 0 : i32
    return %c0_i32, %c0_i32_0 : i32, i32
  }
  func.func @transform_2(%arg0: i32, %arg1: i32) -> (i32, i32) {
    %c0_i32 = arith.constant 0 : i32
    %c0_i32_0 = arith.constant 0 : i32
    %c0_i32_1 = arith.constant 0 : i32
    return %c0_i32, %c0_i32_0 : i32, i32
  }
  func.func @transform_3(%arg0: i32, %arg1: i32) -> (i32, i32) {
    %c0_i32 = arith.constant 0 : i32
    %c0_i32_0 = arith.constant 0 : i32
    return %c0_i32, %arg1 : i32, i32
  }
  func.func @transform_4(%arg0: i32, %arg1: i32) -> (i32, i32) {
    %c0_i32 = arith.constant 0 : i32
    %c0_i32_0 = arith.constant 0 : i32
    return %c0_i32, %arg1 : i32, i32
  }
  func.func @transform_5(%arg0: i32, %arg1: i32) -> (i32, i32) {
    %c0_i32 = arith.constant 0 : i32
    return %arg0, %arg1 : i32, i32
  }
}

</mosaic_0001>

<bundles_post_ra>
// kernel: tpu_custom_call.1
= control target key start
LH: loop header
LB: loop body
LE: loop exit
PB: predicated region body
PF: predicated region fallthrough
CT: control target
= control target key end

     0   :  { %10 = vsyncpa [#allocation4], 0  ;;  %s1366_s0 = inlined_call_operand.hbm [shape: bf16[8,128], index: 0, kind: input, shape index: {}]   ;;  %s1367_s1 = inlined_call_operand.hbm [shape: bf16[128,512], index: 1, kind: input, shape index: {}]   ;;  %s1368_s2 = inlined_call_operand.vmem [shape: f32[1,512], index: 2, kind: input, shape index: {}]   ;;  %s1369_s3 = inlined_call_operand.hbm [shape: bf16[512,256], index: 3, kind: input, shape index: {}]   ;;  %s1370_s4 = inlined_call_operand.vmem [shape: f32[1,256], index: 4, kind: input, shape index: {}]   ;;  %s1371_s5 = inlined_call_operand.hbm [shape: f32[8,256], index: 5, kind: output, shape index: {}]  }
   0x1   :  { %11 = vsyncpa [#allocation7], 0 }
   0x2   :  { %12 = vsyncpa [#allocation5], 0  ;;  %s1273_s18 = smov [#allocation6]   ;;  %s1179_s22 = scalar_lea.hbm %s1367_s1, 4096 }
   0x3   :  { %s28_s19 = sshll.u32 %s1273_s18, 4  ;;  %p1180_p0 = scmp.ne.s32.totalorder %s1367_s1, %s1179_s22  ;;  %s29_s19 = int_to_ptr.vmem [resolvable:$true] %s28_s19 }
   0x4   :  { %p1183_p1 = scmp.lt.u32.totalorder %s1179_s22, %s1367_s1 }
   0x6   :  { %p1185_p2 = pnand %p1183_p1, %p1180_p0 }
   0x8   :  { %1188 = shalt.err (!%p1185_p2)
}
   0x9   :  { %s1189_s27 = scalar_lea.vmem %s29_s19, 4096  ;;  %p1194_p4 = scmp.lt.s32.totalorder %s29_s19, %s29_s19 }
   0xa   :  { %p1190_p3 = scmp.ne.s32.totalorder %s29_s19, %s1189_s27  ;;  %p1195_p5 = scmp.lt.s32.totalorder %s1189_s27, %s1189_s27 }
   0xc   :  { %p1196_p6 = por %p1195_p5, %p1194_p4 }
   0xe   :  { %p1197_p7 = pnand %p1196_p6, %p1190_p3 }
  0x10   :  { %1200 = shalt.err (!%p1197_p7)
}
  0x11   :  { %s1274_s28 = smov 256   ;;  %s1275_s29 = smov 16  }
  0x12   :  { %34 = dma.hbm_to_vmem [thread:$0]  %s1367_s1, 4096, %s29_s19, [#allocation7], %s1274_s28, %s1274_s28, %s1275_s29  }
  0x13   :  { %s1276_s7 = smov [#allocation3]   ;;  %s1277_s9 = smov [#allocation8]  }
  0x14   :  { %s19_s8 = sshll.u32 %s1276_s7, 4  ;;  %s42_s10 = sshll.u32 %s1277_s9, 4  ;;  %s20_s8 = int_to_ptr.vmem [resolvable:$true] %s19_s8  ;;  %s43_s10 = int_to_ptr.vmem [resolvable:$true] %s42_s10 }
  0x15   :  { %s1201_s13 = scalar_lea.hbm %s1366_s0, 64 }
  0x16   :  { %p1202_p8 = scmp.ne.s32.totalorder %s1366_s0, %s1201_s13  ;;  %p1205_p9 = scmp.lt.u32.totalorder %s1201_s13, %s1366_s0 }
  0x18   :  { %p1207_p10 = pnand %p1205_p9, %p1202_p8 }
  0x1a   :  { %1210 = shalt.err (!%p1207_p10)
}
  0x1b   :  { %s1211_s1 = scalar_lea.vmem %s20_s8, 64  ;;  %p1216_p12 = scmp.lt.s32.totalorder %s20_s8, %s20_s8 }
  0x1c   :  { %p1212_p11 = scmp.ne.s32.totalorder %s20_s8, %s1211_s1  ;;  %p1217_p13 = scmp.lt.s32.totalorder %s1211_s1, %s1211_s1 }
  0x1e   :  { %p1218_p0 = por %p1217_p13, %p1216_p12 }
  0x20   :  { %p1219_p1 = pnand %p1218_p0, %p1212_p11 }
  0x22   :  { %1222 = shalt.err (!%p1219_p1)
}
  0x23   :  { %22 = dma.hbm_to_vmem [thread:$0]  %s1366_s0, 64, %s20_s8, [#allocation4]  }
  0x24   :  { %s1223_s22 = scalar_lea.hbm %s1369_s3, 8192 }
  0x25   :  { %p1224_p2 = scmp.ne.s32.totalorder %s1369_s3, %s1223_s22  ;;  %p1227_p3 = scmp.lt.u32.totalorder %s1223_s22, %s1369_s3 }
  0x27   :  { %p1229_p4 = pnand %p1227_p3, %p1224_p2 }
  0x29   :  { %1232 = shalt.err (!%p1229_p4)
}
  0x2a   :  { %s1233_s27 = scalar_lea.vmem %s43_s10, 8192  ;;  %p1238_p6 = scmp.lt.s32.totalorder %s43_s10, %s43_s10 }
  0x2b   :  { %p1234_p5 = scmp.ne.s32.totalorder %s43_s10, %s1233_s27  ;;  %p1239_p7 = scmp.lt.s32.totalorder %s1233_s27, %s1233_s27 }
  0x2d   :  { %p1240_p8 = por %p1239_p7, %p1238_p6 }
  0x2f   :  { %p1241_p9 = pnand %p1240_p8, %p1234_p5 }
  0x31   :  { %1244 = shalt.err (!%p1241_p9)
}
  0x32   :  { %s1278_s0 = smov 128   ;;  %s1279_s28 = smov 8  }
  0x33   :  { %48 = dma.hbm_to_vmem [thread:$0]  %s1369_s3, 8192, %s43_s10, [#allocation7], %s1278_s0, %s1278_s0, %s1279_s28  }
  0x34   :  { %1267 = dma.done.wait [#allocation4], 64  }
  0x35   :  { %1268 = vsyncadd [#allocation4], 4294967232 }
  0x36   :  { %1269 = dma.done.wait [#allocation7], 12288  }
  0x37   :  { %1270 = vsyncadd [#allocation7], 4294955008  ;;  %v1280_v0 = vmov 0   ;;  %v1027_v1 = vld [vmem:[#allocation6 + $0x4] ss:$16 sps:$4 sm:$0xff]  }
  0x38   :  { %312 = vmatprep.mubr.bf16.mxu0 %v1280_v0  ;;  %353 = vmatprep.mubr.bf16.mxu1 %v1280_v0  ;;  %v1029_v2 = vld [vmem:[#allocation6 + $0xc] ss:$16 sps:$4 sm:$0xff]   ;;  %v1031_v3 = vld [vmem:[#allocation6] ss:$16 sps:$4 sm:$0xff]   ;;  %v1032_v4 = vld [vmem:[#allocation6 + $0x8] ss:$16 sps:$4 sm:$0xff]  }
  0x39   :  { %280 = vmatprep.subr.bf16.mxu0 %v1027_v1  ;;  %321 = vmatprep.subr.bf16.mxu1 %v1029_v2  ;;  %v1033_v5 = vld [vmem:[#allocation6 + $0x24] ss:$16 sps:$4 sm:$0xff]   ;;  %v1035_v6 = vld [vmem:[#allocation6 + $0x2c] ss:$16 sps:$4 sm:$0xff]   ;;  %v1037_v7 = vld [vmem:[#allocation6 + $0x20] ss:$16 sps:$4 sm:$0xff]  }
  0x3a   :  { %281 = vmatpush1.bf16.msra.mxu0 %v1031_v3  ;;  %322 = vmatpush1.bf16.msra.mxu1 %v1032_v4  ;;  %v1038_v8 = vld [vmem:[#allocation6 + $0x28] ss:$16 sps:$4 sm:$0xff]   ;;  %v1039_v9 = vld [vmem:[#allocation6 + $0x44] ss:$16 sps:$4 sm:$0xff]   ;;  %v1041_v10 = vld [vmem:[#allocation6 + $0x4c] ss:$16 sps:$4 sm:$0xff]  }
  0x3b   :  { %282 = vmatprep.subr.bf16.mxu0 %v1033_v5  ;;  %323 = vmatprep.subr.bf16.mxu1 %v1035_v6  ;;  %v1043_v11 = vld [vmem:[#allocation6 + $0x40] ss:$16 sps:$4 sm:$0xff]   ;;  %v1044_v12 = vld [vmem:[#allocation6 + $0x48] ss:$16 sps:$4 sm:$0xff]   ;;  %v1045_v13 = vld [vmem:[#allocation6 + $0x64] ss:$16 sps:$4 sm:$0xff]  }
  0x3c   :  { %v1047_v14 = vld [vmem:[#allocation6 + $0x6c] ss:$16 sps:$4 sm:$0xff]   ;;  %v1049_v15 = vld [vmem:[#allocation6 + $0x60] ss:$16 sps:$4 sm:$0xff]   ;;  %v1050_v16 = vld [vmem:[#allocation6 + $0x68] ss:$16 sps:$4 sm:$0xff]  }
  0x3d   :  { %v1051_v17 = vld [vmem:[#allocation6 + $0x84] ss:$16 sps:$4 sm:$0xff]   ;;  %v1053_v18 = vld [vmem:[#allocation6 + $0x8c] ss:$16 sps:$4 sm:$0xff]   ;;  %v1055_v19 = vld [vmem:[#allocation6 + $0x80] ss:$16 sps:$4 sm:$0xff]  }
  0x3e   :  { %283 = vmatpush1.bf16.msra.mxu0 %v1037_v7  ;;  %324 = vmatpush1.bf16.msra.mxu1 %v1038_v8  ;;  %v1056_v20 = vld [vmem:[#allocation6 + $0x88] ss:$16 sps:$4 sm:$0xff]   ;;  %v1057_v21 = vld [vmem:[#allocation6 + $0xa4] ss:$16 sps:$4 sm:$0xff]   ;;  %v1059_v22 = vld [vmem:[#allocation6 + $0xac] ss:$16 sps:$4 sm:$0xff]  }
  0x3f   :  { %284 = vmatprep.subr.bf16.mxu0 %v1039_v9  ;;  %325 = vmatprep.subr.bf16.mxu1 %v1041_v10  ;;  %v1061_v23 = vld [vmem:[#allocation6 + $0xa0] ss:$16 sps:$4 sm:$0xff]   ;;  %v1062_v24 = vld [vmem:[#allocation6 + $0xa8] ss:$16 sps:$4 sm:$0xff]   ;;  %v1063_v25 = vld [vmem:[#allocation6 + $0xc4] ss:$16 sps:$4 sm:$0xff]  }
  0x40   :  { %v1065_v26 = vld [vmem:[#allocation6 + $0xcc] ss:$16 sps:$4 sm:$0xff]   ;;  %v1067_v27 = vld [vmem:[#allocation6 + $0xc0] ss:$16 sps:$4 sm:$0xff]   ;;  %v1068_v28 = vld [vmem:[#allocation6 + $0xc8] ss:$16 sps:$4 sm:$0xff]  }
  0x41   :  { %v1069_v29 = vld [vmem:[#allocation6 + $0xe4] ss:$16 sps:$4 sm:$0xff]   ;;  %v1071_v30 = vld [vmem:[#allocation6 + $0xec] ss:$16 sps:$4 sm:$0xff]   ;;  %v1073_v31 = vld [vmem:[#allocation6 + $0xe0] ss:$16 sps:$4 sm:$0xff]  }
  0x42   :  { %285 = vmatpush1.bf16.msra.mxu0 %v1043_v11  ;;  %326 = vmatpush1.bf16.msra.mxu1 %v1044_v12  ;;  %v1074_v32 = vld [vmem:[#allocation6 + $0xe8] ss:$16 sps:$4 sm:$0xff]   ;;  %v1077_v33 = vld [vmem:[#allocation8 + $0x4] ss:$8 sps:$4 sm:$0xff]   ;;  %v65_v35 = vld [vmem:[#allocation3] sm:$0xf] }
  0x43   :  { %286 = vmatprep.subr.bf16.mxu0 %v1045_v13  ;;  %327 = vmatprep.subr.bf16.mxu1 %v1047_v14  ;;  %v1080_v34 = vld [vmem:[#allocation8 + $0x104] ss:$8 sps:$4 sm:$0xff]   ;;  %v1075_v36 = vld [vmem:[#allocation8] ss:$8 sps:$4 sm:$0xff]   ;;  %v1083_v38 = vld [vmem:[#allocation8 + $0x14] ss:$8 sps:$4 sm:$0xff]  }
  0x44   :  { %v1078_v37 = vld [vmem:[#allocation8 + $0x100] ss:$8 sps:$4 sm:$0xff]   ;;  %v1086_v39 = vld [vmem:[#allocation8 + $0x114] ss:$8 sps:$4 sm:$0xff]   ;;  %v1081_v40 = vld [vmem:[#allocation8 + $0x10] ss:$8 sps:$4 sm:$0xff]  }
  0x45   :  { %v1084_v41 = vld [vmem:[#allocation8 + $0x110] ss:$8 sps:$4 sm:$0xff]   ;;  %v1089_v42 = vld [vmem:[#allocation8 + $0x24] ss:$8 sps:$4 sm:$0xff]   ;;  %v1087_v44 = vld [vmem:[#allocation8 + $0x20] ss:$8 sps:$4 sm:$0xff]  }
  0x46   :  { %287 = vmatpush1.bf16.msra.mxu0 %v1049_v15  ;;  %328 = vmatpush1.bf16.msra.mxu1 %v1050_v16  ;;  %v1092_v43 = vld [vmem:[#allocation8 + $0x124] ss:$8 sps:$4 sm:$0xff]   ;;  %v1090_v45 = vld [vmem:[#allocation8 + $0x120] ss:$8 sps:$4 sm:$0xff]   ;;  %v1095_v46 = vld [vmem:[#allocation8 + $0x34] ss:$8 sps:$4 sm:$0xff]  }
  0x47   :  { %288 = vmatprep.subr.bf16.mxu0 %v1051_v17  ;;  %329 = vmatprep.subr.bf16.mxu1 %v1053_v18  ;;  %v1098_v47 = vld [vmem:[#allocation8 + $0x134] ss:$8 sps:$4 sm:$0xff]   ;;  %v1093_v48 = vld [vmem:[#allocation8 + $0x30] ss:$8 sps:$4 sm:$0xff]   ;;  %v1101_v50 = vld [vmem:[#allocation8 + $0x44] ss:$8 sps:$4 sm:$0xff]  }
  0x48   :  { %v1096_v49 = vld [vmem:[#allocation8 + $0x130] ss:$8 sps:$4 sm:$0xff]   ;;  %v1104_v51 = vld [vmem:[#allocation8 + $0x144] ss:$8 sps:$4 sm:$0xff]   ;;  %v1099_v52 = vld [vmem:[#allocation8 + $0x40] ss:$8 sps:$4 sm:$0xff]  }
  0x49   :  { %v1102_v53 = vld [vmem:[#allocation8 + $0x140] ss:$8 sps:$4 sm:$0xff]   ;;  %v1107_v54 = vld [vmem:[#allocation8 + $0x54] ss:$8 sps:$4 sm:$0xff]   ;;  %v1105_v56 = vld [vmem:[#allocation8 + $0x50] ss:$8 sps:$4 sm:$0xff]  }
  0x4a   :  { %289 = vmatpush1.bf16.msra.mxu0 %v1055_v19  ;;  %330 = vmatpush1.bf16.msra.mxu1 %v1056_v20  ;;  %v1110_v55 = vld [vmem:[#allocation8 + $0x154] ss:$8 sps:$4 sm:$0xff]   ;;  %v1108_v57 = vld [vmem:[#allocation8 + $0x150] ss:$8 sps:$4 sm:$0xff]   ;;  %v1113_v58 = vld [vmem:[#allocation8 + $0x64] ss:$8 sps:$4 sm:$0xff]  }
  0x4b   :  { %290 = vmatprep.subr.bf16.mxu0 %v1057_v21  ;;  %331 = vmatprep.subr.bf16.mxu1 %v1059_v22  ;;  %v1116_v59 = vld [vmem:[#allocation8 + $0x164] ss:$8 sps:$4 sm:$0xff]   ;;  %v1111_v60 = vld [vmem:[#allocation8 + $0x60] ss:$8 sps:$4 sm:$0xff]   ;;  %v1119_v62 = vld [vmem:[#allocation8 + $0x74] ss:$8 sps:$4 sm:$0xff]  }
  0x4c   :  { %v1114_v61 = vld [vmem:[#allocation8 + $0x160] ss:$8 sps:$4 sm:$0xff]   ;;  %v1122_v63 = vld [vmem:[#allocation8 + $0x174] ss:$8 sps:$4 sm:$0xff]   ;;  %v1117_v0 = vld [vmem:[#allocation8 + $0x70] ss:$8 sps:$4 sm:$0xff]  }
  0x4d   :  { %v1120_v1 = vld [vmem:[#allocation8 + $0x170] ss:$8 sps:$4 sm:$0xff]   ;;  %v1125_v2 = vld [vmem:[#allocation8 + $0x84] ss:$8 sps:$4 sm:$0xff]   ;;  %v1123_v4 = vld [vmem:[#allocation8 + $0x80] ss:$8 sps:$4 sm:$0xff]  }
  0x4e   :  { %291 = vmatpush1.bf16.msra.mxu0 %v1061_v23  ;;  %332 = vmatpush1.bf16.msra.mxu1 %v1062_v24  ;;  %v1128_v3 = vld [vmem:[#allocation8 + $0x184] ss:$8 sps:$4 sm:$0xff]   ;;  %v1126_v5 = vld [vmem:[#allocation8 + $0x180] ss:$8 sps:$4 sm:$0xff]   ;;  %v1131_v6 = vld [vmem:[#allocation8 + $0x94] ss:$8 sps:$4 sm:$0xff]  }
  0x4f   :  { %292 = vmatprep.subr.bf16.mxu0 %v1063_v25  ;;  %333 = vmatprep.subr.bf16.mxu1 %v1065_v26  ;;  %v1134_v7 = vld [vmem:[#allocation8 + $0x194] ss:$8 sps:$4 sm:$0xff]   ;;  %v1129_v8 = vld [vmem:[#allocation8 + $0x90] ss:$8 sps:$4 sm:$0xff]   ;;  %v1137_v10 = vld [vmem:[#allocation8 + $0xa4] ss:$8 sps:$4 sm:$0xff]  }
  0x50   :  { %v1132_v9 = vld [vmem:[#allocation8 + $0x190] ss:$8 sps:$4 sm:$0xff]   ;;  %v1140_v11 = vld [vmem:[#allocation8 + $0x1a4] ss:$8 sps:$4 sm:$0xff]   ;;  %v1135_v12 = vld [vmem:[#allocation8 + $0xa0] ss:$8 sps:$4 sm:$0xff]  }
  0x51   :  { %v1138_v13 = vld [vmem:[#allocation8 + $0x1a0] ss:$8 sps:$4 sm:$0xff]   ;;  %v1143_v14 = vld [vmem:[#allocation8 + $0xb4] ss:$8 sps:$4 sm:$0xff]   ;;  %v1141_v16 = vld [vmem:[#allocation8 + $0xb0] ss:$8 sps:$4 sm:$0xff]  }
  0x52   :  { %293 = vmatpush1.bf16.msra.mxu0 %v1067_v27  ;;  %334 = vmatpush1.bf16.msra.mxu1 %v1068_v28  ;;  %v1146_v15 = vld [vmem:[#allocation8 + $0x1b4] ss:$8 sps:$4 sm:$0xff]   ;;  %v1144_v17 = vld [vmem:[#allocation8 + $0x1b0] ss:$8 sps:$4 sm:$0xff]   ;;  %v1149_v18 = vld [vmem:[#allocation8 + $0xc4] ss:$8 sps:$4 sm:$0xff]  }
  0x53   :  { %294 = vmatprep.subr.bf16.mxu0 %v1069_v29  ;;  %335 = vmatprep.subr.bf16.mxu1 %v1071_v30  ;;  %v1152_v19 = vld [vmem:[#allocation8 + $0x1c4] ss:$8 sps:$4 sm:$0xff]   ;;  %v1147_v20 = vld [vmem:[#allocation8 + $0xc0] ss:$8 sps:$4 sm:$0xff]   ;;  %v1155_v22 = vld [vmem:[#allocation8 + $0xd4] ss:$8 sps:$4 sm:$0xff]  }
  0x54   :  { %v1150_v21 = vld [vmem:[#allocation8 + $0x1c0] ss:$8 sps:$4 sm:$0xff]   ;;  %v1158_v23 = vld [vmem:[#allocation8 + $0x1d4] ss:$8 sps:$4 sm:$0xff]   ;;  %v1153_v24 = vld [vmem:[#allocation8 + $0xd0] ss:$8 sps:$4 sm:$0xff]  }
  0x55   :  { %v1156_v25 = vld [vmem:[#allocation8 + $0x1d0] ss:$8 sps:$4 sm:$0xff]   ;;  %v1161_v26 = vld [vmem:[#allocation8 + $0xe4] ss:$8 sps:$4 sm:$0xff]   ;;  %v1159_v28 = vld [vmem:[#allocation8 + $0xe0] ss:$8 sps:$4 sm:$0xff]  }
  0x56   :  { %295 = vmatpush1.bf16.msra.mxu0 %v1073_v31  ;;  %336 = vmatpush1.bf16.msra.mxu1 %v1074_v32  ;;  %v1164_v27 = vld [vmem:[#allocation8 + $0x1e4] ss:$8 sps:$4 sm:$0xff]   ;;  %v1162_v29 = vld [vmem:[#allocation8 + $0x1e0] ss:$8 sps:$4 sm:$0xff]   ;;  %v1167_v30 = vld [vmem:[#allocation8 + $0xf4] ss:$8 sps:$4 sm:$0xff]  }
  0x57   :  { %796 = vmatprep.subr.bf16.mxu1 %v1077_v33  ;;  %837 = vmatprep.subr.bf16.mxu0 %v1080_v34  ;;  %v1170_v31 = vld [vmem:[#allocation8 + $0x1f4] ss:$8 sps:$4 sm:$0xff]   ;;  %v1165_v32 = vld [vmem:[#allocation8 + $0xf0] ss:$8 sps:$4 sm:$0xff]   ;;  %v100_v34 = vlaneseq }
  0x58   :  { %v1168_v33 = vld [vmem:[#allocation8 + $0x1f0] ss:$8 sps:$4 sm:$0xff]  }
  0x59   :  { %313 = vmatmul.mubr.bf16.vlgmr.msra.gmra.mrb[0].mxu0 %v65_v35  ;;  %354 = vmatmul.mubr.bf16.vlgmr.msra.gmra.mrb[0].mxu1 %v65_v35  ;;  %v101_v35 = vshrl.u32 %v100_v34, 7 }
  0x5a   :  { %797 = vmatpush1.bf16.msra.mxu1 %v1075_v36  ;;  %838 = vmatpush1.bf16.msra.mxu0 %v1078_v37 }
  0x5b   :  { %798 = vmatprep.subr.bf16.mxu1 %v1083_v38  ;;  %839 = vmatprep.subr.bf16.mxu0 %v1086_v39  ;;  %v102_v36 = vsub.s32 0, %v101_v35  ;;  %v110_v37 = vsub.s32 2, %v101_v35  ;;  %v98_v38 = vld [vmem:[%s1368_s2] sm:$0xf]  ;;  %v106_v39 = vsub.s32 1, %v101_v35 }
  0x5e   :  { %799 = vmatpush1.bf16.msra.mxu1 %v1081_v40  ;;  %840 = vmatpush1.bf16.msra.mxu0 %v1084_v41  ;;  %v114_v40 = vsub.s32 3, %v101_v35  ;;  %v103_v41 = vrot.slane %v98_v38, %v102_v36 }
  0x5f   :  { %800 = vmatprep.subr.bf16.mxu1 %v1089_v42  ;;  %841 = vmatprep.subr.bf16.mxu0 %v1092_v43  ;;  %v111_v42 = vrot.slane %v98_v38, %v110_v37  ;;  %v107_v43 = vrot.slane %v98_v38, %v106_v39 }
  0x62   :  { %801 = vmatpush1.bf16.msra.mxu1 %v1087_v44  ;;  %842 = vmatpush1.bf16.msra.mxu0 %v1090_v45  ;;  %v115_v44 = vrot.slane %v98_v38, %v114_v40 }
  0x63   :  { %802 = vmatprep.subr.bf16.mxu1 %v1095_v46  ;;  %843 = vmatprep.subr.bf16.mxu0 %v1098_v47 }
  0x66   :  { %803 = vmatpush1.bf16.msra.mxu1 %v1093_v48  ;;  %844 = vmatpush1.bf16.msra.mxu0 %v1096_v49 }
  0x67   :  { %804 = vmatprep.subr.bf16.mxu1 %v1101_v50  ;;  %845 = vmatprep.subr.bf16.mxu0 %v1104_v51 }
  0x6a   :  { %805 = vmatpush1.bf16.msra.mxu1 %v1099_v52  ;;  %846 = vmatpush1.bf16.msra.mxu0 %v1102_v53 }
  0x6b   :  { %806 = vmatprep.subr.bf16.mxu1 %v1107_v54  ;;  %847 = vmatprep.subr.bf16.mxu0 %v1110_v55 }
  0x6e   :  { %807 = vmatpush1.bf16.msra.mxu1 %v1105_v56  ;;  %848 = vmatpush1.bf16.msra.mxu0 %v1108_v57 }
  0x6f   :  { %808 = vmatprep.subr.bf16.mxu1 %v1113_v58  ;;  %849 = vmatprep.subr.bf16.mxu0 %v1116_v59 }
  0x72   :  { %809 = vmatpush1.bf16.msra.mxu1 %v1111_v60  ;;  %850 = vmatpush1.bf16.msra.mxu0 %v1114_v61 }
  0x73   :  { %810 = vmatprep.subr.bf16.mxu1 %v1119_v62  ;;  %851 = vmatprep.subr.bf16.mxu0 %v1122_v63 }
  0x76   :  { %811 = vmatpush1.bf16.msra.mxu1 %v1117_v0  ;;  %852 = vmatpush1.bf16.msra.mxu0 %v1120_v1  ;;  %v450_v1 = vld [vmem:[%s1370_s4] sm:$0x3]  ;;  %s1281_s4 = smov [#allocation9]  }
  0x77   :  { %812 = vmatprep.subr.bf16.mxu1 %v1125_v2  ;;  %853 = vmatprep.subr.bf16.mxu0 %v1128_v3  ;;  %v455_v2 = vrot.slane %v450_v1, %v102_v36  ;;  %v459_v3 = vrot.slane %v450_v1, %v106_v39  ;;  %s896_s8 = sshll.u32 %s1281_s4, 4  ;;  %s897_s8 = int_to_ptr.vmem [resolvable:$true] %s896_s8 }
  0x78   :  { %s1245_s9 = scalar_lea.vmem %s897_s8, 256  ;;  %p1250_p11 = scmp.lt.s32.totalorder %s897_s8, %s897_s8 }
  0x79   :  { %p1246_p10 = scmp.ne.s32.totalorder %s897_s8, %s1245_s9  ;;  %p1251_p12 = scmp.lt.s32.totalorder %s1245_s9, %s1245_s9 }
  0x7a   :  { %813 = vmatpush1.bf16.msra.mxu1 %v1123_v4  ;;  %854 = vmatpush1.bf16.msra.mxu0 %v1126_v5 }
  0x7b   :  { %814 = vmatprep.subr.bf16.mxu1 %v1131_v6  ;;  %855 = vmatprep.subr.bf16.mxu0 %v1134_v7  ;;  %p1252_p13 = por %p1251_p12, %p1250_p11 }
  0x7d   :  { %p1253_p0 = pnand %p1252_p13, %p1246_p10 }
  0x7e   :  { %815 = vmatpush1.bf16.msra.mxu1 %v1129_v8  ;;  %856 = vmatpush1.bf16.msra.mxu0 %v1132_v9 }
  0x7f   :  { %816 = vmatprep.subr.bf16.mxu1 %v1137_v10  ;;  %857 = vmatprep.subr.bf16.mxu0 %v1140_v11 }
  0x82   :  { %817 = vmatpush1.bf16.msra.mxu1 %v1135_v12  ;;  %858 = vmatpush1.bf16.msra.mxu0 %v1138_v13 }
  0x83   :  { %818 = vmatprep.subr.bf16.mxu1 %v1143_v14  ;;  %859 = vmatprep.subr.bf16.mxu0 %v1146_v15 }
  0x86   :  { %819 = vmatpush1.bf16.msra.mxu1 %v1141_v16  ;;  %860 = vmatpush1.bf16.msra.mxu0 %v1144_v17 }
  0x87   :  { %820 = vmatprep.subr.bf16.mxu1 %v1149_v18  ;;  %861 = vmatprep.subr.bf16.mxu0 %v1152_v19 }
  0x8a   :  { %821 = vmatpush1.bf16.msra.mxu1 %v1147_v20  ;;  %862 = vmatpush1.bf16.msra.mxu0 %v1150_v21 }
  0x8b   :  { %822 = vmatprep.subr.bf16.mxu1 %v1155_v22  ;;  %863 = vmatprep.subr.bf16.mxu0 %v1158_v23 }
  0x8e   :  { %823 = vmatpush1.bf16.msra.mxu1 %v1153_v24  ;;  %864 = vmatpush1.bf16.msra.mxu0 %v1156_v25 }
  0x8f   :  { %824 = vmatprep.subr.bf16.mxu1 %v1161_v26  ;;  %865 = vmatprep.subr.bf16.mxu0 %v1164_v27 }
  0x92   :  { %825 = vmatpush1.bf16.msra.mxu1 %v1159_v28  ;;  %866 = vmatpush1.bf16.msra.mxu0 %v1162_v29 }
  0x93   :  { %826 = vmatprep.subr.bf16.mxu1 %v1167_v30  ;;  %867 = vmatprep.subr.bf16.mxu0 %v1170_v31 }
  0x96   :  { %827 = vmatpush1.bf16.msra.mxu1 %v1165_v32  ;;  %868 = vmatpush1.bf16.msra.mxu0 %v1168_v33 }
 0x12c   :  { %v314_v45 = vpop.f32.mrb[0].mxu0  ;;  %v355_v46 = vpop.f32.mrb[0].mxu1 }
 0x12d   :  { %v315_v47 = vadd.f32 %v314_v45, %v103_v41  ;;  %v356_v48 = vadd.f32 %v355_v46, %v111_v42  ;;  %v316_v49 = vpop.f32.mrb[1].mxu0  ;;  %v357_v50 = vpop.f32.mrb[1].mxu1 }
 0x12e   :  { %v317_v51 = vadd.f32 %v316_v49, %v107_v43  ;;  %v358_v52 = vadd.f32 %v357_v50, %v115_v44  ;;  %v318_v53 = vpop.f32.mrb[2].mxu0  ;;  %v359_v54 = vpop.f32.mrb[2].mxu1 }
 0x12f   :  { %v362_v55 = vmax.f32 %v315_v47, 0.0  ;;  %v364_v56 = vmax.f32 %v356_v48, 0.0  ;;  %v319_v57 = vpop.f32.mrb[3].mxu0  ;;  %v360_v58 = vpop.f32.mrb[3].mxu1 }
 0x130   :  { %v363_v59 = vmax.f32 %v317_v51, 0.0  ;;  %v365_v60 = vmax.f32 %v358_v52, 0.0 }
 0x131   :  { %v1012_v61 = vpack.c.bf16 %v364_v56, %v364_v56  ;;  %v1010_v0 = vpack.c.bf16 %v362_v55, %v362_v55 }
 0x132   :  { %v1011_v62 = vpack.c.bf16 %v363_v59, %v363_v59  ;;  %v1013_v63 = vpack.c.bf16 %v365_v60, %v365_v60 }
 0x134   :  { %828 = vmatprep.mubr.bf16.mxu1 %v1011_v62  ;;  %869 = vmatprep.mubr.bf16.mxu0 %v1013_v63 }
 0x135   :  { %829 = vmatmul.mubr.bf16.vlgmr.msra.gmra.mrb[4].mxu1 %v1010_v0  ;;  %870 = vmatmul.mubr.bf16.vlgmr.msra.gmra.mrb[4].mxu0 %v1012_v61 }
 0x208   :  { %v830_v4 = vpop.f32.mrb[4].mxu1  ;;  %v871_v5 = vpop.f32.mrb[4].mxu0 }
 0x209   :  { %v831_v6 = vadd.f32 %v830_v4, %v455_v2  ;;  %v832_v7 = vpop.f32.mrb[5].mxu1  ;;  %v873_v8 = vpop.f32.mrb[5].mxu0 }
 0x20a   :  { %v833_v9 = vadd.f32 %v832_v7, %v459_v3  ;;  %v834_v10 = vpop.f32.mrb[6].mxu1  ;;  %v875_v11 = vpop.f32.mrb[6].mxu0 }
 0x20b   :  { %v872_v12 = vadd.f32 %v871_v5, %v831_v6  ;;  %v835_v13 = vpop.f32.mrb[7].mxu1  ;;  %v876_v14 = vpop.f32.mrb[7].mxu0 }
 0x20c   :  { %v874_v15 = vadd.f32 %v873_v8, %v833_v9 }
 0x20d   :  { %v878_v16 = vsub.f32 0.0, %v872_v12 }
 0x20e   :  { %v879_v17 = vsub.f32 0.0, %v874_v15 }
 0x20f   :  { %v880_v18 = vmul.f32 1.442695, %v878_v16 }
 0x210   :  { %v882_v19 = vmul.f32 1.442695, %v879_v17 }
 0x211   :  { %1171 = vpow2.f32 %v880_v18 }
 0x212   :  { %1173 = vpow2.f32 %v882_v19 }
 0x21b   :  { %v1172_v20 = vpop.eup %1171 }
 0x21c   :  { %v1174_v21 = vpop.eup %1173  ;;  %v884_v22 = vadd.f32 1.0, %v1172_v20 }
 0x21d   :  { %v885_v23 = vadd.f32 1.0, %v1174_v21 }
 0x21e   :  { %1175 = vrcp.f32 %v884_v22 }
 0x21f   :  { %1177 = vrcp.f32 %v885_v23 }
 0x228   :  { %v1176_v24 = vpop.eup %1175 }
 0x229   :  { %v1178_v25 = vpop.eup %1177  ;;  %888 = vst [vmem:[#allocation9] sm:$0xff] %v1176_v24 }
 0x22a   :  { %889 = vst [vmem:[#allocation9 + $0x8] sm:$0xff] %v1178_v25 }
 0x22b   :  { %1256 = shalt.err (!%p1253_p0)
}
 0x22c   :  { %s1257_s12 = scalar_lea.hbm %s1371_s5, 256 }
 0x22d   :  { %p1258_p1 = scmp.ne.s32.totalorder %s1371_s5, %s1257_s12  ;;  %p1261_p2 = scmp.lt.u32.totalorder %s1257_s12, %s1371_s5 }
 0x22f   :  { %p1263_p3 = pnand %p1261_p2, %p1258_p1 }
 0x231   :  { %1266 = shalt.err (!%p1263_p3)
}
 0x232   :  { %899 = dma.vmem_to_hbm [thread:$0]  %s897_s8, 256, %s1371_s5, [#allocation5]  }
 0x233   :  { %1271 = dma.done.wait [#allocation5], 256  }
 0x234   :  { %1272 = vsyncadd [#allocation5], 4294967040 }
 0x235   :  { %903 = vsyncpa [#allocation4], 1 }
 0x236   :  { %904 = vsyncpa [#allocation7], 1 }
 0x237   :  { %905 = vsyncpa [#allocation5], 1 }

</bundles_post_ra>
